<compile_context>
chip_gen: v5e
topology: v5e:2x2
jax: 0.10.0
libtpu: 0.0.40
codegen_flags: <defaults>
</compile_context>

<pallas_src>
import functools
import math

import jax
import jax.numpy as jnp
from jax import lax
from jax.experimental import pallas as pl
from jax.experimental.pallas import tpu as pltpu


def _round_up(x, m):
    return ((x + m - 1) // m) * m


def _ntxent_logdenom_kernel(zr_ref, zc_ref, out_ref, denom_acc, *,
                            n_valid, tm, tn, acc_width, pad_cols, shift):
    i = pl.program_id(0)          # row (anchor) tile
    j = pl.program_id(1)          # col (contrast) tile -- reduction axis
    n_j = pl.num_programs(1)

    @pl.when(j == 0)
    def _():
        denom_acc[...] = jnp.zeros_like(denom_acc)

    # (tm, D) x (D, tn) -> (tm, tn) on the MXU; 1/T is already folded into
    # both operands by the wrapper, so these are the logits directly.
    logits = jnp.dot(zr_ref[...], zc_ref[...],
                     preferred_element_type=jnp.float32)
    # Optional static log-sum-exp shift (only enabled for very small T where
    # exp(1/T) would overflow f32); added back in the finalize block.
    e = jnp.exp(logits - shift) if shift != 0.0 else jnp.exp(logits)

    def _fold(x):
        # (tm, tn) -> (tm, acc_width) using lane-aligned 128-wide slices and
        # plain VPU adds (no per-step cross-lane XLU reduce).
        acc = x[:, 0:acc_width]
        for g in range(1, tn // acc_width):
            acc = acc + x[:, g * acc_width:(g + 1) * acc_width]
        return acc

    # Mask work only on tiles that touch the diagonal or the padded tail.
    on_diag = jnp.logical_and(i * tm < (j + 1) * tn, j * tn < (i + 1) * tm)
    if pad_cols:
        needs_mask = jnp.logical_or(on_diag, j == n_j - 1)
    else:
        needs_mask = on_diag

    @pl.when(jnp.logical_not(needs_mask))
    def _():
        denom_acc[...] += _fold(e)

    @pl.when(needs_mask)
    def _():
        row = i * tm + lax.broadcasted_iota(jnp.int32, (tm, tn), 0)
        col = j * tn + lax.broadcasted_iota(jnp.int32, (tm, tn), 1)
        mask = row != col                                    # negatives_mask
        if pad_cols:
            mask = jnp.logical_and(mask, col < n_valid)      # drop padded cols
        denom_acc[...] += _fold(jnp.where(mask, e, 0.0))

    @pl.when(j == n_j - 1)
    def _():
        denom = jnp.sum(denom_acc[...], axis=1, keepdims=True)
        out_ref[...] = jnp.log(denom) + shift


def group_supcon_loss(emb_i, emb_j, *, temperature=0.5,
                      matmul_dtype=jnp.bfloat16):
    """JAX/Pallas equivalent of GroupSupConLoss.forward(emb_i, emb_j)."""
    if emb_i.ndim != 2 or emb_j.ndim != 2 or emb_i.shape != emb_j.shape:
        raise ValueError("emb_i and emb_j must both be [batch, dim] with equal shapes")
    bsz, dim = emb_i.shape
    n = 2 * bsz
    t = float(temperature)

    # F.normalize(., dim=1) in f32.
    def _norm(x):
        x32 = x.astype(jnp.float32)
        nrm = jnp.sqrt(jnp.sum(x32 * x32, axis=1, keepdims=True))
        return x32 / jnp.maximum(nrm, 1e-12)

    z_i = _norm(emb_i)
    z_j = _norm(emb_j)

    # Positive-pair term hoisted out of the kernel (O(N*D), f32):
    #   positives[r] = sim[r, (r+B) mod N] = <z_i[r], z_j[r]> for both halves.
    pos = jnp.sum(z_i * z_j, axis=1)                        # (B,)

    z = jnp.concatenate([z_i, z_j], axis=0)                 # (N, D) f32

    # Fold 1/T into both matmul operands: (z*s) @ (z*s).T == sim / T, s = 1/sqrt(T).
    z_scaled = (z * (1.0 / math.sqrt(t))).astype(matmul_dtype)

    # Tile selection: single tile for small N, otherwise 512x512 tiles.  The
    # contrast stream is re-read N/tm times so large tm cuts HBM traffic; for
    # N > 512 there are always >= 2 row tiles (v7x megacore).
    if n <= 512:
        n_pad = _round_up(n, 8)
        tm = tn = n_pad
    else:
        tm = tn = 512
        n_pad = _round_up(n, 512)
    # TODO(synk): for very large feature dims (D >= ~4k) add a third
    # 'arbitrary' K grid axis with a (tm, tn) f32 sim accumulator so the
    # double-buffered input tiles stay inside v7x's 64 MiB VMEM.

    if n_pad != n:
        z_scaled = jnp.pad(z_scaled, ((0, n_pad - n), (0, 0)))
    z_t = z_scaled.T                                        # (D, N_pad) pre-transposed contrast

    acc_width = 128 if (tn % 128 == 0) else tn
    pad_cols = n_pad != n
    # Static LSE shift: |logit| <= 1/T for normalized rows, so exp only risks
    # f32 overflow for very small temperatures.
    inv_t = 1.0 / t
    shift = inv_t if inv_t > 60.0 else 0.0

    grid = (n_pad // tm, n_pad // tn)

    kernel = functools.partial(
        _ntxent_logdenom_kernel,
        n_valid=n, tm=tm, tn=tn, acc_width=acc_width,
        pad_cols=pad_cols, shift=shift)

    # Per-generation VMEM budget with headroom (never the full physical VMEM).
    try:
        vmem_cap = int(pltpu.get_tpu_info().vmem_capacity_bytes)
    except Exception:
        vmem_cap = 64 << 20
    vmem_limit = min((vmem_cap * 3) // 4, 96 << 20)

    itemsize = jnp.dtype(matmul_dtype).itemsize
    row_tiles = n_pad // tm
    cost = pl.CostEstimate(
        flops=2 * n_pad * n_pad * dim,
        transcendentals=n_pad * n_pad,
        bytes_accessed=int(row_tiles * n_pad * dim * itemsize   # contrast re-read
                           + n_pad * dim * itemsize             # anchor stream
                           + n_pad * 4),                        # per-row output
    )

    log_denom = pl.pallas_call(
        kernel,
        out_shape=jax.ShapeDtypeStruct((n_pad, 1), jnp.float32),
        grid_spec=pltpu.PrefetchScalarGridSpec(
            num_scalar_prefetch=0,
            grid=grid,
            in_specs=[
                pl.BlockSpec((tm, dim), lambda i, j: (i, 0)),   # anchor rows
                pl.BlockSpec((dim, tn), lambda i, j: (0, j)),   # contrast cols (pre-transposed)
            ],
            out_specs=pl.BlockSpec((tm, 1), lambda i, j: (i, 0)),
            scratch_shapes=[
                pltpu.VMEM((tm, acc_width), jnp.float32),       # lane-dense denominator acc
            ],
        ),
        compiler_params=pltpu.CompilerParams(
            dimension_semantics=("parallel", "arbitrary"),
            vmem_limit_bytes=int(vmem_limit),
        ),
        cost_estimate=cost,
    )(z_scaled, z_t)

    # loss = sum_r ( log(denom_r) - pos_r / T ) / N ; padded rows are dropped.
    return (jnp.sum(log_denom[:n, 0]) - 2.0 * jnp.sum(pos) / t) / n


def _reference(emb_i, emb_j, temperature=0.5):
    """Pure-JAX transcription of the PyTorch forward for sanity checking."""
    bsz = emb_i.shape[0]
    z_i = emb_i / jnp.maximum(jnp.linalg.norm(emb_i, axis=1, keepdims=True), 1e-12)
    z_j = emb_j / jnp.maximum(jnp.linalg.norm(emb_j, axis=1, keepdims=True), 1e-12)
    reps = jnp.concatenate([z_i, z_j], axis=0)
    rn = reps / jnp.maximum(jnp.linalg.norm(reps, axis=1, keepdims=True), 1e-8)
    sim = rn @ rn.T
    sim_ij = jnp.diagonal(sim, offset=bsz)
    sim_ji = jnp.diagonal(sim, offset=-bsz)
    positives = jnp.concatenate([sim_ij, sim_ji], axis=0)
    nominator = jnp.exp(positives / temperature)
    neg_mask = 1.0 - jnp.eye(2 * bsz, dtype=jnp.float32)
    denominator = neg_mask * jnp.exp(sim / temperature)
    loss_partial = -jnp.log(nominator / jnp.sum(denominator, axis=1))
    return jnp.sum(loss_partial) / (2 * bsz)


if __name__ == "__main__":
    key = jax.random.PRNGKey(0)
    k_i, k_j = jax.random.split(key)

    bsz, dim = 8, 32
    emb_i = jax.random.normal(k_i, (bsz, dim), dtype=jnp.float32)
    emb_j = jax.random.normal(k_j, (bsz, dim), dtype=jnp.float32)

    ref = _reference(emb_i, emb_j, 0.5)

    # Full-precision matmul path: tight check against the reference.
    loss_f32 = group_supcon_loss(emb_i, emb_j, temperature=0.5,
                                 matmul_dtype=jnp.float32)
    loss_f32 = jax.block_until_ready(loss_f32)
    assert jnp.isfinite(loss_f32), "f32 loss is not finite"
    assert jnp.allclose(loss_f32, ref, rtol=1e-4, atol=1e-4), (loss_f32, ref)

    # Default bf16-matmul path (MXU-friendly): looser tolerance.
    loss_bf16 = group_supcon_loss(emb_i, emb_j, temperature=0.5)
    loss_bf16 = jax.block_until_ready(loss_bf16)
    assert jnp.isfinite(loss_bf16), "bf16 loss is not finite"
    assert jnp.allclose(loss_bf16, ref, rtol=2e-2, atol=2e-2), (loss_bf16, ref)

    print("KERNEL_OK")
</pallas_src>

<mosaic_0001>
module attributes {stable_mosaic.version = 11 : i64} {
  func.func @_ntxent_logdenom_kernel(%arg0: i32, %arg1: i32, %arg2: memref<16x32xf32, #tpu.memory_space<vmem>>, %arg3: memref<32x16xf32, #tpu.memory_space<vmem>>, %arg4: memref<16x1xf32, #tpu.memory_space<vmem>>, %arg5: memref<16x16xf32, #tpu.memory_space<vmem>>) attributes {dimension_semantics = [#tpu.dimension_semantics<parallel>, #tpu.dimension_semantics<arbitrary>], iteration_bounds = array<i64: 1, 1>, scalar_prefetch = 0 : i64, scratch_operands = 1 : i64, tpu.core_type = #tpu.core_type<tc>, window_params = [{transform_indices = @transform_0, window_bounds = array<i64: 16, 32>}, {transform_indices = @transform_1, window_bounds = array<i64: 32, 16>}, {transform_indices = @transform_2, window_bounds = array<i64: 16, 1>}]} {
    %c0_i32 = arith.constant 0 : i32
    %0 = arith.cmpi eq, %arg1, %c0_i32 : i32
    %1 = arith.extui %0 : i1 to i32
    %c0_i32_0 = arith.constant 0 : i32
    %2 = arith.cmpi ne, %1, %c0_i32_0 : i32
    scf.if %2 {
      %cst_12 = arith.constant 0.000000e+00 : f32
      %24 = vector.broadcast %cst_12 : f32 to vector<16x16xf32>
      %c0_13 = arith.constant 0 : index
      %c0_14 = arith.constant 0 : index
      %25 = vector.load %arg5[%c0_13, %c0_14] : memref<16x16xf32, #tpu.memory_space<vmem>>, vector<16x16xf32>
      tpu.vector_store %arg5[%c0_13, %c0_14], %24 {strides = array<i32>} : memref<16x16xf32, #tpu.memory_space<vmem>>, vector<16x16xf32>,
    } else {
    }
    %c0 = arith.constant 0 : index
    %c0_1 = arith.constant 0 : index
    %3 = vector.load %arg2[%c0, %c0_1] : memref<16x32xf32, #tpu.memory_space<vmem>>, vector<16x32xf32>
    %c0_2 = arith.constant 0 : index
    %c0_3 = arith.constant 0 : index
    %4 = vector.load %arg3[%c0_2, %c0_3] : memref<32x16xf32, #tpu.memory_space<vmem>>, vector<32x16xf32>
    %cst = arith.constant dense<0.000000e+00> : vector<16x16xf32>
    %5 = tpu.matmul %3, %4, %cst {dimension_numbers = #tpu.dot_dimension_numbers<[1], [0], [0], [1], [0, 0, 1, 1], [], []>} : vector<16x32xf32>, vector<32x16xf32>, vector<16x16xf32> -> vector<16x16xf32>
    %6 = math.exp %5 : vector<16x16xf32>
    %c16_i32 = arith.constant 16 : i32
    %7 = arith.muli %arg0, %c16_i32 : i32
    %c1_i32 = arith.constant 1 : i32
    %8 = arith.addi %arg1, %c1_i32 : i32
    %c16_i32_4 = arith.constant 16 : i32
    %9 = arith.muli %8, %c16_i32_4 : i32
    %10 = arith.cmpi slt, %7, %9 : i32
    %c16_i32_5 = arith.constant 16 : i32
    %11 = arith.muli %arg1, %c16_i32_5 : i32
    %c1_i32_6 = arith.constant 1 : i32
    %12 = arith.addi %arg0, %c1_i32_6 : i32
    %c16_i32_7 = arith.constant 16 : i32
    %13 = arith.muli %12, %c16_i32_7 : i32
    %14 = arith.cmpi slt, %11, %13 : i32
    %15 = arith.andi %10, %14 : i1
    %true = arith.constant true
    %16 = arith.xori %15, %true : i1
    %17 = arith.extui %16 : i1 to i32
    %c0_i32_8 = arith.constant 0 : i32
    %18 = arith.cmpi ne, %17, %c0_i32_8 : i32
    scf.if %18 {
      %c0_12 = arith.constant 0 : index
      %c0_13 = arith.constant 0 : index
      %24 = vector.load %arg5[%c0_12, %c0_13] : memref<16x16xf32, #tpu.memory_space<vmem>>, vector<16x16xf32>
      %25 = arith.addf %24, %6 : vector<16x16xf32>
      %c0_14 = arith.constant 0 : index
      %c0_15 = arith.constant 0 : index
      %26 = vector.load %arg5[%c0_14, %c0_15] : memref<16x16xf32, #tpu.memory_space<vmem>>, vector<16x16xf32>
      tpu.vector_store %arg5[%c0_14, %c0_15], %25 {strides = array<i32>} : memref<16x16xf32, #tpu.memory_space<vmem>>, vector<16x16xf32>,
    } else {
    }
    %19 = arith.extui %15 : i1 to i32
    %c0_i32_9 = arith.constant 0 : i32
    %20 = arith.cmpi ne, %19, %c0_i32_9 : i32
    scf.if %20 {
      %c16_i32_12 = arith.constant 16 : i32
      %24 = arith.muli %arg0, %c16_i32_12 : i32
      %25 = tpu.iota {dimensions = array<i32: 0>} : vector<16x16xi32>
      %26 = vector.broadcast %24 : i32 to vector<16x16xi32>
      %27 = arith.addi %26, %25 : vector<16x16xi32>
      %c16_i32_13 = arith.constant 16 : i32
      %28 = arith.muli %arg1, %c16_i32_13 : i32
      %29 = tpu.iota {dimensions = array<i32: 1>} : vector<16x16xi32>
      %30 = vector.broadcast %28 : i32 to vector<16x16xi32>
      %31 = arith.addi %30, %29 : vector<16x16xi32>
      %32 = arith.cmpi ne, %27, %31 : vector<16x16xi32>
      %c0_14 = arith.constant 0 : index
      %c0_15 = arith.constant 0 : index
      %33 = vector.load %arg5[%c0_14, %c0_15] : memref<16x16xf32, #tpu.memory_space<vmem>>, vector<16x16xf32>
      %cst_16 = arith.constant 0.000000e+00 : f32
      %34 = vector.broadcast %cst_16 : f32 to vector<16x16xf32>
      %35 = arith.select %32, %6, %34 : vector<16x16xi1>, vector<16x16xf32>
      %36 = arith.addf %33, %35 : vector<16x16xf32>
      %c0_17 = arith.constant 0 : index
      %c0_18 = arith.constant 0 : index
      %37 = vector.load %arg5[%c0_17, %c0_18] : memref<16x16xf32, #tpu.memory_space<vmem>>, vector<16x16xf32>
      tpu.vector_store %arg5[%c0_17, %c0_18], %36 {strides = array<i32>} : memref<16x16xf32, #tpu.memory_space<vmem>>, vector<16x16xf32>,
    } else {
    }
    %c0_i32_10 = arith.constant 0 : i32
    %21 = arith.cmpi eq, %arg1, %c0_i32_10 : i32
    %22 = arith.extui %21 : i1 to i32
    %c0_i32_11 = arith.constant 0 : i32
    %23 = arith.cmpi ne, %22, %c0_i32_11 : i32
    scf.if %23 {
      %c0_12 = arith.constant 0 : index
      %c0_13 = arith.constant 0 : index
      %24 = vector.load %arg5[%c0_12, %c0_13] : memref<16x16xf32, #tpu.memory_space<vmem>>, vector<16x16xf32>
      %cst_14 = arith.constant dense<0.000000e+00> : vector<16xf32>
      %25 = vector.multi_reduction <add>, %24, %cst_14 [1] : vector<16x16xf32> to vector<16xf32>
      %26 = vector.shape_cast %25 : vector<16xf32> to vector<16x1xf32>
      %27 = math.log %26 : vector<16x1xf32>
      %cst_15 = arith.constant 0.000000e+00 : f32
      %28 = vector.broadcast %cst_15 : f32 to vector<16x1xf32>
      %29 = arith.addf %27, %28 : vector<16x1xf32>
      %c0_16 = arith.constant 0 : index
      %c0_17 = arith.constant 0 : index
      %30 = vector.load %arg4[%c0_16, %c0_17] : memref<16x1xf32, #tpu.memory_space<vmem>>, vector<16x1xf32>
      tpu.vector_store %arg4[%c0_16, %c0_17], %29 {strides = array<i32>} : memref<16x1xf32, #tpu.memory_space<vmem>>, vector<16x1xf32>,
    } else {
    }
    return
  }
  func.func @transform_0(%arg0: i32, %arg1: i32) -> (i32, i32) {
    %c0_i32 = arith.constant 0 : i32
    %c0_i32_0 = arith.constant 0 : i32
    return %arg0, %c0_i32 : i32, i32
  }
  func.func @transform_1(%arg0: i32, %arg1: i32) -> (i32, i32) {
    %c0_i32 = arith.constant 0 : i32
    %c0_i32_0 = arith.constant 0 : i32
    return %c0_i32, %arg1 : i32, i32
  }
  func.func @transform_2(%arg0: i32, %arg1: i32) -> (i32, i32) {
    %c0_i32 = arith.constant 0 : i32
    %c0_i32_0 = arith.constant 0 : i32
    return %arg0, %c0_i32 : i32, i32
  }
}

</mosaic_0001>

<bundles_post_ra>
// kernel: tpu_custom_call.1
= control target key start
LH: loop header
LB: loop body
LE: loop exit
PB: predicated region body
PF: predicated region fallthrough
CT: control target
= control target key end

     0   :  { %vm15_vm0 = vcmask 130048   ;;  %v141_v2 = vmov 0.0   ;;  %vm24_vm1 = vcmask 261120   ;;  %v70_v7 = vlaneseq  ;;  %s187_s1 = inlined_call_operand.vmem [shape: f32[32,16], index: 1, kind: input, shape index: {}]   ;;  %s188_s0 = inlined_call_operand.vmem [shape: f32[16,32], index: 0, kind: input, shape index: {}]   ;;  %s189_s2 = inlined_call_operand.vmem [shape: f32[16,1], index: 2, kind: output, shape index: {}]  }
   0x1   :  { %v23_v0 = vld [vmem:[%s187_s1 + $0x18] sm:$0xff]  ;;  %v22_v1 = vld [vmem:[%s187_s1 + $0x10] sm:$0xff]  ;;  %16 = vst.msk [vmem:[#allocation2] sm:$0xff] %vm15_vm0, %v141_v2  ;;  %v21_v3 = vld [vmem:[%s187_s1 + $0x8] sm:$0xff]  ;;  %vm119_vm4 = vcmask 7168  }
   0x2   :  { %43 = vmatpush.msra.mxu0 %v23_v0  ;;  %128 = vmatpush.msra.mxu1 %v23_v0  ;;  %17 = vst.msk [vmem:[#allocation2 + $0x8] sm:$0xff] %vm15_vm0, %v141_v2  ;;  %v20_v4 = vld [vmem:[%s187_s1] sm:$0xff]  ;;  %v19_v6 = vld [vmem:[%s188_s0 + $0x8] sm:$0xff]  ;;  %v71_v12 = vshrl.u32 %v70_v7, 7  ;;  %v77_v13 = vand.u32 127, %v70_v7 }
   0x3   :  { %v18_v5 = vld [vmem:[%s188_s0] sm:$0xff] }
   0x4   :  { %44 = vmatpush.msra.mxu0 %v22_v1  ;;  %129 = vmatpush.msra.mxu1 %v22_v1  ;;  %v72_v14 = vadd.s32 8, %v71_v12  ;;  %vm80_vm2 = vcmp.ne.s32.totalorder %v71_v12, %v77_v13 }
   0x6   :  { %45 = vmatpush.msra.mxu0 %v21_v3  ;;  %130 = vmatpush.msra.mxu1 %v21_v3  ;;  %vm81_vm3 = vcmp.ne.s32.totalorder %v72_v14, %v77_v13 }
   0x8   :  { %46 = vmatpush.msra.mxu0 %v20_v4  ;;  %131 = vmatpush.msra.mxu1 %v20_v4  ;;  %v82_v15 = vld [vmem:[#allocation2] sm:$0xff] }
   0x9   :  { %126 = vmatmul.msk.f32.vlgmr.msra.gmra.mxu0 %vm24_vm1, %v18_v5  ;;  %127 = vmatmul.msk.f32.vlgmr.msra.gmra.mxu1 %vm24_vm1, %v19_v6  ;;  %v83_v17 = vld [vmem:[#allocation2 + $0x8] sm:$0xff] }
  0x86   :  { %v48_v8 = vpop.f32.mrf.mxu0  ;;  %v51_v9 = vpop.f32.mrf.mxu1 }
  0x87   :  { %v54_v10 = vmul.f32 1.442695, %v48_v8  ;;  %v56_v11 = vmul.f32 1.442695, %v51_v9 }
  0x89   :  { %133 = vpow2.f32 %v54_v10 }
  0x8a   :  { %135 = vpow2.f32 %v56_v11 }
  0x8f   :  { %v134_v16 = vpop.eup %133 }
  0x90   :  { %v136_v18 = vpop.eup %135  ;;  %v84_v19 = vsel %vm80_vm2, %v134_v16, 0.0 }
  0x91   :  { %v86_v20 = vadd.f32 %v84_v19, %v82_v15  ;;  %v85_v21 = vsel %vm81_vm3, %v136_v18, 0.0 }
  0x92   :  { %v87_v22 = vadd.f32 %v85_v21, %v83_v17 }
  0x93   :  { %89 = vst.msk [vmem:[#allocation2] sm:$0xff] %vm15_vm0, %v86_v20 }
  0x94   :  { %90 = vst.msk [vmem:[#allocation2 + $0x8] sm:$0xff] %vm15_vm0, %v87_v22 }
  0x9a   :  { %v104_v23 = vld [vmem:[#allocation2] sm:$0xff] }
  0x9b   :  { %v107_v24 = vsel %vm15_vm0, %v104_v23, 0.0  ;;  %v105_v25 = vld [vmem:[#allocation2 + $0x8] sm:$0xff] }
  0x9c   :  { %108 = vadd.xlane.f32.xlu0 %v107_v24  ;;  %v110_v26 = vsel %vm15_vm0, %v105_v25, 0.0 }
  0xa4   :  { %111 = vadd.xlane.f32.xlu0 %v110_v26 }
 0x10f   :  { %v109_v27 = vpop.xlane.xlu0 %108 }
 0x110   :  { %137 = vlog2.f32 %v109_v27 }
 0x116   :  { %v138_v28 = vpop.eup %137 }
 0x117   :  { %v114_v29 = vmul.f32 0.6931472, %v138_v28  ;;  %v112_v30 = vpop.xlane.xlu0 %111 }
 0x118   :  { %139 = vlog2.f32 %v112_v30 }
 0x119   :  { %120 = vst.msk [vmem:[%s189_s2] sm:$0xff] %vm119_vm4, %v114_v29 }
 0x11e   :  { %v140_v31 = vpop.eup %139 }
 0x11f   :  { %v116_v32 = vmul.f32 0.6931472, %v140_v31 }
 0x121   :  { %121 = vst.msk [vmem:[%s189_s2 + $0x8] sm:$0xff] %vm119_vm4, %v116_v32 }

</bundles_post_ra>
